<compile_context>
chip_gen: v6e
topology: v6e:2x2x1
jax: 0.10.0
libtpu: 0.0.40
codegen_flags: <defaults>
</compile_context>

<pallas_src>
import jax
import jax.numpy as jnp
from jax.experimental import pallas as pl
from jax.experimental.pallas import tpu as pltpu


_LANE_WIDTHS = (2048, 1024, 512, 256, 128)
_TARGET_TILE_BYTES = 4 * 1024 * 1024   # ~4 MiB / tile -> ~16 MiB resident
_VMEM_LIMIT_BYTES = 48 * 1024 * 1024   # safe on v5e/v6e (128 MiB) and v7x (64 MiB/TC)


def _occlusion_similarity_kernel(thr_ref, x_ref, o_ref):
    x = x_ref[...]
    t = thr_ref[0, 0].astype(x.dtype)   # compare/select in the block dtype
    o_ref[...] = jnp.where(x <= t, jnp.zeros_like(x), x)


def _choose_layout(n, itemsize):
    """Pick (width, rows, tile_rows) for a lane-dense 2D slab, or None if
    the element count is not a multiple of 128 (caller falls back to XLA)."""
    # Dtype-aware sublane multiple: 8 (f32), 16 (bf16/f16), 32 (int8/fp8).
    sub = 8 * max(1, 4 // int(itemsize))
    for width in _LANE_WIDTHS:
        if n % width == 0:
            rows = n // width
            target_rows = max(
                sub, (_TARGET_TILE_BYTES // (width * int(itemsize))) // sub * sub
            )
            if rows <= target_rows:
                # Single full-extent block (block_shape == array dims is legal
                # even when rows is not a sublane multiple).
                return width, rows, rows
            # cdiv grid; last block may overrun `rows` and is masked by Pallas.
            return width, rows, target_rows
    return None


@jax.jit
def occlusion_aware_similarity(similarity_matrix, threshold):
    """out = where(x <= threshold, 0, x), streamed through a Pallas TPU kernel."""
    orig_shape = similarity_matrix.shape
    dtype = similarity_matrix.dtype
    n = similarity_matrix.size
    thr32 = jnp.asarray(threshold, dtype=jnp.float32)
    if n == 0:
        return similarity_matrix

    layout = _choose_layout(n, dtype.itemsize)
    if layout is None:
        # Ragged element count (n % 128 != 0): a single fused jnp.where is
        # already at the HBM roofline; a padded Pallas path would only add
        # extra full passes over HBM.
        t = thr32.astype(dtype)
        return jnp.where(similarity_matrix <= t,
                         jnp.zeros_like(similarity_matrix),
                         similarity_matrix)

    width, rows, tile_rows = layout
    x2d = similarity_matrix.reshape(rows, width)
    thr = thr32.reshape(1, 1)

    block = (tile_rows, width)
    grid = (pl.cdiv(rows, tile_rows),)

    out2d = pl.pallas_call(
        _occlusion_similarity_kernel,
        out_shape=jax.ShapeDtypeStruct((rows, width), dtype),
        grid_spec=pltpu.PrefetchScalarGridSpec(
            num_scalar_prefetch=0,
            grid=grid,
            in_specs=[
                pl.BlockSpec(memory_space=pltpu.MemorySpace.SMEM),   # threshold
                pl.BlockSpec(block, lambda i: (i, 0)),
            ],
            out_specs=pl.BlockSpec(block, lambda i: (i, 0)),
        ),
        compiler_params=pltpu.CompilerParams(
            dimension_semantics=("parallel",),
            vmem_limit_bytes=_VMEM_LIMIT_BYTES,
        ),
        cost_estimate=pl.CostEstimate(
            flops=int(n),
            transcendentals=0,
            bytes_accessed=2 * int(n) * int(dtype.itemsize),
        ),
    )(thr, x2d)

    return out2d.reshape(orig_shape)


if __name__ == "__main__":
    key = jax.random.PRNGKey(0)
    threshold = 0.2

    # Main path: NCHW-like similarity matrix, n divisible by 128.
    x = jax.random.normal(key, (2, 4, 16, 16), dtype=jnp.float32)
    out = jax.block_until_ready(occlusion_aware_similarity(x, threshold))
    ref = jnp.where(x <= jnp.float32(threshold), 0.0, x)
    assert out.shape == x.shape and out.dtype == x.dtype
    assert bool(jnp.allclose(out, ref)), "mismatch vs reference (f32 path)"

    # bf16 path: exercises the in-kernel threshold cast (in-dtype compare).
    xb = jax.random.normal(jax.random.PRNGKey(0), (4, 8, 16, 16),
                           dtype=jnp.bfloat16)
    outb = jax.block_until_ready(occlusion_aware_similarity(xb, threshold))
    tb = jnp.asarray(threshold, jnp.float32).astype(jnp.bfloat16)
    refb = jnp.where(xb <= tb, jnp.zeros_like(xb), xb)
    assert bool(jnp.array_equal(outb, refb)), "mismatch vs reference (bf16 path)"

    # Ragged element count: uses the fused jnp.where fallback.
    y = jax.random.normal(jax.random.PRNGKey(0), (3, 5, 7, 11), dtype=jnp.float32)
    out2 = jax.block_until_ready(occlusion_aware_similarity(y, threshold))
    ref2 = jnp.where(y <= jnp.float32(threshold), 0.0, y)
    assert bool(jnp.allclose(out2, ref2)), "mismatch vs reference (fallback path)"

    print("KERNEL_OK")
</pallas_src>

<mosaic_0001>
module attributes {stable_mosaic.version = 11 : i64} {
  func.func @_occlusion_similarity_kernel(%arg0: i32, %arg1: memref<1x1xf32, #tpu.memory_space<smem>>, %arg2: memref<1x2048xf32, #tpu.memory_space<vmem>>, %arg3: memref<1x2048xf32, #tpu.memory_space<vmem>>) attributes {dimension_semantics = [#tpu.dimension_semantics<parallel>], iteration_bounds = array<i64: 1>, scalar_prefetch = 0 : i64, scratch_operands = 0 : i64, tpu.core_type = #tpu.core_type<tc>, window_params = [{transform_indices = @transform_0, window_bounds = array<i64: 1, 1>}, {transform_indices = @transform_1, window_bounds = array<i64: 1, 2048>}, {transform_indices = @transform_2, window_bounds = array<i64: 1, 2048>}]} {
    %c0 = arith.constant 0 : index
    %c0_0 = arith.constant 0 : index
    %0 = vector.load %arg2[%c0, %c0_0] : memref<1x2048xf32, #tpu.memory_space<vmem>>, vector<1x2048xf32>
    %c0_1 = arith.constant 0 : index
    %c0_2 = arith.constant 0 : index
    %1 = memref.load %arg1[%c0_1, %c0_2] : memref<1x1xf32, #tpu.memory_space<smem>>
    %2 = vector.broadcast %1 : f32 to vector<1x2048xf32>
    %3 = arith.cmpf ole, %0, %2 : vector<1x2048xf32>
    %cst = arith.constant 0.000000e+00 : f32
    %4 = vector.broadcast %cst : f32 to vector<1x2048xf32>
    %5 = arith.select %3, %4, %0 : vector<1x2048xi1>, vector<1x2048xf32>
    %c0_3 = arith.constant 0 : index
    %c0_4 = arith.constant 0 : index
    %6 = vector.load %arg3[%c0_3, %c0_4] : memref<1x2048xf32, #tpu.memory_space<vmem>>, vector<1x2048xf32>
    tpu.vector_store %arg3[%c0_3, %c0_4], %5 {strides = array<i32>} : memref<1x2048xf32, #tpu.memory_space<vmem>>, vector<1x2048xf32>,
    return
  }
  func.func @transform_0(%arg0: i32) -> (i32, i32) {
    %c0_i32 = arith.constant 0 : i32
    %c0_i32_0 = arith.constant 0 : i32
    %c0_i32_1 = arith.constant 0 : i32
    return %c0_i32, %c0_i32_0 : i32, i32
  }
  func.func @transform_1(%arg0: i32) -> (i32, i32) {
    %c0_i32 = arith.constant 0 : i32
    %c0_i32_0 = arith.constant 0 : i32
    return %arg0, %c0_i32 : i32, i32
  }
  func.func @transform_2(%arg0: i32) -> (i32, i32) {
    %c0_i32 = arith.constant 0 : i32
    %c0_i32_0 = arith.constant 0 : i32
    return %arg0, %c0_i32 : i32, i32
  }
}

</mosaic_0001>

<bundles_post_ra>
// kernel: occlusion_aware_similarity.1
= control target key start
LH: loop header
LB: loop body
LE: loop exit
PB: predicated region body
PF: predicated region fallthrough
CT: control target
= control target key end

     0   :  { %s56_s0 = inlined_call_operand.<no memory space> [shape: f32[1,1], index: 0, kind: input, shape index: {}]   ;;  %s57_s1 = inlined_call_operand.vmem [shape: f32[1,2048], index: 1, kind: input, shape index: {}]   ;;  %s58_s2 = inlined_call_operand.vmem [shape: f32[1,2048], index: 2, kind: output, shape index: {}]  }
   0x1   :  { %v12_v0 = vld [vmem:[%s57_s1] sm:$0xff]  ;;  %v15_v1 = vstv %s56_s0  ;;  %v13_v2 = vld [vmem:[%s57_s1 + $0x8] sm:$0xff] }
   0x2   :  { %vm16_vm0 = vcmp.le.f32.partialorder %v12_v0, %v15_v1  ;;  %vm17_vm1 = vcmp.le.f32.partialorder %v13_v2, %v15_v1 }
   0x3   :  { %v18_v3 = vsel %vm16_vm0, 0.0, %v12_v0  ;;  %v19_v4 = vsel %vm17_vm1, 0.0, %v13_v2 }
   0x4   :  { %20 = vst [vmem:[%s58_s2] sm:$0xff] %v18_v3  ;;  %21 = vst [vmem:[%s58_s2 + $0x8] sm:$0xff] %v19_v4 }

</bundles_post_ra>
